<compile_context>
chip_gen: v6e
topology: v6e:2x2x1
jax: 0.10.0
libtpu: 0.0.40
codegen_flags: <defaults>
</compile_context>

<pallas_src>
import functools

import jax
import jax.numpy as jnp
from jax import lax
from jax.experimental import pallas as pl
from jax.experimental.pallas import tpu as pltpu


def _postprocess_kernel(boxes_ref, logits_ref,
                        boxes_out_ref, scores_ref, classes_ref,
                        *, img_w, img_h):
    """One batch tile.

    boxes_ref     : [TB, Q*4]  lane-dense (cx, cy, w, h, cx, cy, ...)
    logits_ref    : [TB, Q, C]
    boxes_out_ref : [TB, Q*4]
    scores_ref    : [TB, Q]
    classes_ref   : [TB, Q]    float32
    """
    # ---- box scaling: even lanes (cx, w) * W, odd lanes (cy, h) * H -------
    boxes = boxes_ref[...]
    lane = lax.broadcasted_iota(jnp.int32, boxes.shape, 1)
    w = jnp.asarray(img_w, dtype=boxes.dtype)
    h = jnp.asarray(img_h, dtype=boxes.dtype)
    boxes_out_ref[...] = boxes * jnp.where((lane & 1) == 0, w, h)

    # ---- score / class extraction (reduction over the class axis) ---------
    logits = logits_ref[...]                                   # [TB, Q, C]
    scores = jnp.max(logits, axis=-1)                          # [TB, Q]
    scores_ref[...] = scores

    # argmax with first-occurrence tie-breaking (matches torch.max)
    c = logits.shape[-1]
    class_iota = lax.broadcasted_iota(jnp.int32, logits.shape, 2)
    idx = jnp.min(jnp.where(logits == scores[..., None], class_iota, c),
                  axis=-1)                                     # [TB, Q] int32
    # Clamp keeps the index in-range if a row is all-NaN (no logit compares
    # equal to the max); torch would produce an arbitrary index there anyway.
    idx = jnp.minimum(idx, c - 1)
    classes_ref[...] = idx.astype(jnp.float32)


def _pick_batch_tile(B, Q, C, itemsize, budget_bytes=12 << 20):
    """Largest batch tile that (a) divides B, (b) is sublane-aligned or covers
    the whole batch (so the [B, Q*4] / [B, Q] BlockSpecs satisfy the (8,128)
    rule), (c) fits a conservative double-buffered VMEM budget, and (d) leaves
    >=2 grid steps when possible (two TensorCores / megacore)."""
    per_b = 2 * itemsize * (Q * C + Q * 4)     # double-buffered inputs
    per_b += 2 * 4 * (Q * 4 + Q + Q)           # double-buffered f32 outputs
    max_tb = max(1, budget_bytes // per_b)
    cands = [d for d in range(1, B + 1)
             if B % d == 0 and (d % 8 == 0 or d == B)]
    multi = [d for d in cands if d <= max_tb and B // d >= 2]
    if multi:
        return max(multi)
    fits = [d for d in cands if d <= max_tb]
    return max(fits) if fits else min(cands)


def post_process(pred_boxes, pred_logits, img_size):
    """img_size = (H, W), mirroring the PyTorch module."""
    B, Q, _ = pred_boxes.shape
    _, _, C = pred_logits.shape
    img_h, img_w = img_size

    Q4 = Q * 4
    boxes2d = pred_boxes.reshape(B, Q4)        # contiguous -> free reshape

    itemsize = max(pred_boxes.dtype.itemsize, pred_logits.dtype.itemsize)
    tb = _pick_batch_tile(B, Q, C, itemsize)
    grid = (B // tb,)

    kernel = functools.partial(_postprocess_kernel,
                               img_w=float(img_w), img_h=float(img_h))

    out_shapes = (
        jax.ShapeDtypeStruct((B, Q4), pred_boxes.dtype),   # boxes (flat)
        jax.ShapeDtypeStruct((B, Q), pred_logits.dtype),   # scores
        jax.ShapeDtypeStruct((B, Q), jnp.float32),         # classes (float)
    )

    grid_spec = pltpu.PrefetchScalarGridSpec(
        num_scalar_prefetch=0,
        grid=grid,
        in_specs=[
            pl.BlockSpec((tb, Q4), lambda b: (b, 0)),
            pl.BlockSpec((tb, Q, C), lambda b: (b, 0, 0)),
        ],
        out_specs=[
            pl.BlockSpec((tb, Q4), lambda b: (b, 0)),
            pl.BlockSpec((tb, Q), lambda b: (b, 0)),
            pl.BlockSpec((tb, Q), lambda b: (b, 0)),
        ],
    )

    in_bytes = (B * Q4 * pred_boxes.dtype.itemsize
                + B * Q * C * pred_logits.dtype.itemsize)
    out_bytes = (B * Q4 * pred_boxes.dtype.itemsize
                 + B * Q * pred_logits.dtype.itemsize
                 + B * Q * 4)
    cost = pl.CostEstimate(
        flops=B * Q * (2 * C + 4),           # max + argmax reduce, box scale
        transcendentals=0,
        bytes_accessed=in_bytes + out_bytes,
    )

    boxes_flat, scores, classes = pl.pallas_call(
        kernel,
        out_shape=out_shapes,
        grid_spec=grid_spec,
        compiler_params=pltpu.CompilerParams(
            dimension_semantics=("parallel",),
            vmem_limit_bytes=32 << 20,
        ),
        cost_estimate=cost,
    )(boxes2d, pred_logits)

    # Restore the PyTorch output shapes: [B,Q,4], [B,Q,1], [B,Q,1].
    return (boxes_flat.reshape(B, Q, 4),
            scores[..., None],
            classes[..., None])


def post_process_ref(pred_boxes, pred_logits, img_size):
    """Pure-JAX reference mirroring the PyTorch forward."""
    img_h, img_w = img_size
    scale = jnp.array([img_w, img_h, img_w, img_h], dtype=pred_boxes.dtype)
    boxes = pred_boxes * scale
    scores = jnp.max(pred_logits, axis=2, keepdims=True)
    classes = jnp.argmax(pred_logits, axis=2)[..., None].astype(jnp.float32)
    return boxes, scores, classes


if __name__ == "__main__":
    key = jax.random.PRNGKey(0)
    kb, kl = jax.random.split(key)

    B, Q, C = 2, 8, 32            # batch, queries, classes
    img_size = (16, 24)           # (H, W)

    pred_boxes = jax.random.uniform(kb, (B, Q, 4), dtype=jnp.float32)
    pred_logits = jax.random.normal(kl, (B, Q, C), dtype=jnp.float32)

    boxes, scores, classes = post_process(pred_boxes, pred_logits, img_size)
    jax.block_until_ready((boxes, scores, classes))

    rb, rs, rc = post_process_ref(pred_boxes, pred_logits, img_size)
    assert jnp.allclose(boxes, rb, atol=1e-6), "boxes mismatch"
    assert jnp.allclose(scores, rs, atol=1e-6), "scores mismatch"
    assert jnp.allclose(classes, rc), "classes mismatch"

    print("KERNEL_OK")
</pallas_src>

<mosaic_0001>
module attributes {stable_mosaic.version = 11 : i64} {
  func.func @_postprocess_kernel(%arg0: i32, %arg1: memref<2x32xf32, #tpu.memory_space<vmem>>, %arg2: memref<2x8x32xf32, #tpu.memory_space<vmem>>, %arg3: memref<2x32xf32, #tpu.memory_space<vmem>>, %arg4: memref<2x8xf32, #tpu.memory_space<vmem>>, %arg5: memref<2x8xf32, #tpu.memory_space<vmem>>) attributes {dimension_semantics = [#tpu.dimension_semantics<parallel>], iteration_bounds = array<i64: 1>, scalar_prefetch = 0 : i64, scratch_operands = 0 : i64, tpu.core_type = #tpu.core_type<tc>, window_params = [{transform_indices = @transform_0, window_bounds = array<i64: 2, 32>}, {transform_indices = @transform_1, window_bounds = array<i64: 2, 8, 32>}, {transform_indices = @transform_2, window_bounds = array<i64: 2, 32>}, {transform_indices = @transform_3, window_bounds = array<i64: 2, 8>}, {transform_indices = @transform_4, window_bounds = array<i64: 2, 8>}]} {
    %c0 = arith.constant 0 : index
    %c0_0 = arith.constant 0 : index
    %0 = vector.load %arg1[%c0, %c0_0] : memref<2x32xf32, #tpu.memory_space<vmem>>, vector<2x32xf32>
    %1 = tpu.iota {dimensions = array<i32: 1>} : vector<2x32xi32>
    %c1_i32 = arith.constant 1 : i32
    %2 = vector.broadcast %c1_i32 : i32 to vector<2x32xi32>
    %3 = arith.andi %1, %2 : vector<2x32xi32>
    %c0_i32 = arith.constant 0 : i32
    %4 = vector.broadcast %c0_i32 : i32 to vector<2x32xi32>
    %5 = arith.cmpi eq, %3, %4 : vector<2x32xi32>
    %cst = arith.constant 2.400000e+01 : f32
    %cst_1 = arith.constant 1.600000e+01 : f32
    %6 = vector.broadcast %cst : f32 to vector<2x32xf32>
    %7 = vector.broadcast %cst_1 : f32 to vector<2x32xf32>
    %8 = arith.select %5, %6, %7 : vector<2x32xi1>, vector<2x32xf32>
    %9 = arith.mulf %0, %8 : vector<2x32xf32>
    %c0_2 = arith.constant 0 : index
    %c0_3 = arith.constant 0 : index
    %10 = vector.load %arg3[%c0_2, %c0_3] : memref<2x32xf32, #tpu.memory_space<vmem>>, vector<2x32xf32>
    tpu.vector_store %arg3[%c0_2, %c0_3], %9 {strides = array<i32>} : memref<2x32xf32, #tpu.memory_space<vmem>>, vector<2x32xf32>,
    %c0_4 = arith.constant 0 : index
    %c0_5 = arith.constant 0 : index
    %c0_6 = arith.constant 0 : index
    %11 = vector.load %arg2[%c0_4, %c0_5, %c0_6] : memref<2x8x32xf32, #tpu.memory_space<vmem>>, vector<2x8x32xf32>
    %cst_7 = arith.constant dense<0xFF800000> : vector<2x8xf32>
    %12 = vector.multi_reduction <maximumf>, %11, %cst_7 [2] : vector<2x8x32xf32> to vector<2x8xf32>
    %c0_8 = arith.constant 0 : index
    %c0_9 = arith.constant 0 : index
    %13 = vector.load %arg4[%c0_8, %c0_9] : memref<2x8xf32, #tpu.memory_space<vmem>>, vector<2x8xf32>
    tpu.vector_store %arg4[%c0_8, %c0_9], %12 {strides = array<i32>} : memref<2x8xf32, #tpu.memory_space<vmem>>, vector<2x8xf32>,
    %14 = tpu.iota {dimensions = array<i32: 2>} : vector<2x8x32xi32>
    %15 = vector.shape_cast %12 : vector<2x8xf32> to vector<2x8x1xf32>
    %16 = vector.broadcast %15 : vector<2x8x1xf32> to vector<2x8x32xf32>
    %17 = arith.cmpf oeq, %11, %16 : vector<2x8x32xf32>
    %c32_i32 = arith.constant 32 : i32
    %18 = vector.broadcast %c32_i32 : i32 to vector<2x8x32xi32>
    %19 = arith.select %17, %14, %18 : vector<2x8x32xi1>, vector<2x8x32xi32>
    %cst_10 = arith.constant dense<2147483647> : vector<2x8xi32>
    %20 = vector.multi_reduction <minsi>, %19, %cst_10 [2] : vector<2x8x32xi32> to vector<2x8xi32>
    %c31_i32 = arith.constant 31 : i32
    %21 = vector.broadcast %c31_i32 : i32 to vector<2x8xi32>
    %22 = arith.minsi %20, %21 : vector<2x8xi32>
    %23 = arith.sitofp %22 : vector<2x8xi32> to vector<2x8xf32>
    %c0_11 = arith.constant 0 : index
    %c0_12 = arith.constant 0 : index
    %24 = vector.load %arg5[%c0_11, %c0_12] : memref<2x8xf32, #tpu.memory_space<vmem>>, vector<2x8xf32>
    tpu.vector_store %arg5[%c0_11, %c0_12], %23 {strides = array<i32>} : memref<2x8xf32, #tpu.memory_space<vmem>>, vector<2x8xf32>,
    return
  }
  func.func @transform_0(%arg0: i32) -> (i32, i32) {
    %c0_i32 = arith.constant 0 : i32
    %c0_i32_0 = arith.constant 0 : i32
    return %arg0, %c0_i32 : i32, i32
  }
  func.func @transform_1(%arg0: i32) -> (i32, i32, i32) {
    %c0_i32 = arith.constant 0 : i32
    %c0_i32_0 = arith.constant 0 : i32
    %c0_i32_1 = arith.constant 0 : i32
    return %arg0, %c0_i32, %c0_i32_0 : i32, i32, i32
  }
  func.func @transform_2(%arg0: i32) -> (i32, i32) {
    %c0_i32 = arith.constant 0 : i32
    %c0_i32_0 = arith.constant 0 : i32
    return %arg0, %c0_i32 : i32, i32
  }
  func.func @transform_3(%arg0: i32) -> (i32, i32) {
    %c0_i32 = arith.constant 0 : i32
    %c0_i32_0 = arith.constant 0 : i32
    return %arg0, %c0_i32 : i32, i32
  }
  func.func @transform_4(%arg0: i32) -> (i32, i32) {
    %c0_i32 = arith.constant 0 : i32
    %c0_i32_0 = arith.constant 0 : i32
    return %arg0, %c0_i32 : i32, i32
  }
}

</mosaic_0001>

<bundles_post_ra>
// kernel: tpu_custom_call.1
= control target key start
LH: loop header
LB: loop body
LE: loop exit
PB: predicated region body
PF: predicated region fallthrough
CT: control target
= control target key end

     0   :  { %10 = vsyncpa [#allocation3], 0  ;;  %s350_s0 = inlined_call_operand.hbm [shape: f32[2,32], index: 0, kind: input, shape index: {}]   ;;  %s351_s1 = inlined_call_operand.hbm [shape: f32[2,8,32], index: 1, kind: input, shape index: {}]   ;;  %s352_s2 = inlined_call_operand.hbm [shape: f32[2,32], index: 2, kind: output, shape index: {0}]   ;;  %s353_s3 = inlined_call_operand.hbm [shape: f32[2,8], index: 3, kind: output, shape index: {1}]   ;;  %s354_s4 = inlined_call_operand.hbm [shape: f32[2,8], index: 4, kind: output, shape index: {2}]  }
   0x1   :  { %11 = vsyncpa [#allocation6], 0 }
   0x2   :  { %12 = vsyncpa [#allocation4], 0 }
   0x3   :  { %13 = vsyncpa [#allocation9], 0  ;;  %s287_s15 = smov [#allocation2]   ;;  %s288_s17 = smov [#allocation5]  }
   0x4   :  { %s20_s16 = sshll.u32 %s287_s15, 4  ;;  %s29_s18 = sshll.u32 %s288_s17, 4  ;;  %s21_s16 = int_to_ptr.vmem [resolvable:$true] %s20_s16  ;;  %s30_s18 = int_to_ptr.vmem [resolvable:$true] %s29_s18 }
   0x5   :  { %s187_s19 = scalar_lea.vmem %s21_s16, 32  ;;  %p192_p1 = scmp.lt.s32.totalorder %s21_s16, %s21_s16 }
   0x6   :  { %p188_p0 = scmp.ne.s32.totalorder %s21_s16, %s187_s19  ;;  %p193_p2 = scmp.lt.s32.totalorder %s187_s19, %s187_s19 }
   0x8   :  { %p194_p3 = por %p193_p2, %p192_p1 }
   0xa   :  { %p195_p4 = pnand %p194_p3, %p188_p0 }
   0xc   :  { %198 = shalt.err (!%p195_p4)
}
   0xd   :  { %23 = dma.hbm_to_vmem [thread:$0]  %s350_s0, 32, %s21_s16, [#allocation3]  }
   0xe   :  { %s207_s22 = scalar_lea.vmem %s30_s18, 256  ;;  %p212_p6 = scmp.lt.s32.totalorder %s30_s18, %s30_s18 }
   0xf   :  { %p208_p5 = scmp.ne.s32.totalorder %s30_s18, %s207_s22  ;;  %p213_p7 = scmp.lt.s32.totalorder %s207_s22, %s207_s22 }
  0x11   :  { %p214_p8 = por %p213_p7, %p212_p6 }
  0x13   :  { %p215_p9 = pnand %p214_p8, %p208_p5 }
  0x15   :  { %218 = shalt.err (!%p215_p9)
}
  0x16   :  { %s289_s23 = smov 128   ;;  %s290_s24 = smov 8  }
  0x17   :  { %35 = dma.hbm_to_vmem [thread:$0]  %s351_s1, 256, %s30_s18, [#allocation6], %s289_s23, %s289_s23, %s290_s24  }
  0x18   :  { %279 = dma.done.wait [#allocation3], 32  }
  0x19   :  { %280 = vsyncadd [#allocation3], 4294967264 }
  0x1a   :  { %281 = dma.done.wait [#allocation6], 256  }
  0x1b   :  { %282 = vsyncadd [#allocation6], 4294967040  ;;  %vm53_vm0 = vcmask 261120   ;;  %v51_v0 = vld [vmem:[#allocation5] sm:$0xff]  ;;  %v52_v1 = vld [vmem:[#allocation5 + $0x8] sm:$0xff]  ;;  %v43_v4 = vlaneseq  ;;  %vm70_vm2 = vcmask 1041409  }
  0x1c   :  { %v54_v2 = vsel %vm53_vm0, %v51_v0, -inf  ;;  %v57_v3 = vsel %vm53_vm0, %v52_v1, -inf  ;;  %vm73_vm4 = vcmask 58368   ;;  %v42_v30 = vld [vmem:[#allocation2] sm:$0x3]  ;;  %v291_v31 = vmov 16.0  }
  0x1d   :  { %55 = vmax.xlane.f32.xlu0 %v54_v2  ;;  %v44_v5 = vand.u32 127, %v43_v4  ;;  %v63_v6 = vshrl.u32 %v43_v4, 7  ;;  %vm49_vm8 = vcmask 254976   ;;  %s292_s0 = smov [#allocation8]   ;;  %s293_s27 = smov [#allocation7]  }
  0x1e   :  { %s144_s1 = sshll.u32 %s292_s0, 4  ;;  %s134_s28 = sshll.u32 %s293_s27, 4  ;;  %s145_s1 = int_to_ptr.vmem [resolvable:$true] %s144_s1  ;;  %s135_s28 = int_to_ptr.vmem [resolvable:$true] %s134_s28 }
  0x1f   :  { %v328_v8 = vsub.s32 %v44_v5, %v63_v6  ;;  %v45_v29 = vand.u32 1, %v44_v5  ;;  %s219_s29 = scalar_lea.vmem %s145_s1, 32  ;;  %p224_p11 = scmp.lt.s32.totalorder %s145_s1, %s145_s1 }
  0x20   :  { %p220_p10 = scmp.ne.s32.totalorder %s145_s1, %s219_s29  ;;  %p225_p12 = scmp.lt.s32.totalorder %s219_s29, %s219_s29 }
  0x21   :  { %58 = vmax.xlane.f32.xlu0 %v57_v3  ;;  %vm46_vm7 = vcmp.eq.s32.totalorder %v45_v29, 0 }
  0x22   :  { %v47_v32 = vsel %vm46_vm7, 24.0, %v291_v31  ;;  %p226_p13 = por %p225_p12, %p224_p11 }
  0x23   :  { %v48_v33 = vmul.f32 %v47_v32, %v42_v30 }
  0x24   :  { %p227_p0 = pnand %p226_p13, %p220_p10 }
  0xa6   :  { %v56_v7 = vpop.xlane.xlu0 %55 }
  0xa7   :  { %vm75_vm1 = vcmp.eq.f32.partialorder %v51_v0, %v56_v7  ;;  %v65_v13 = vrot.slane %v56_v7, %v328_v8 }
  0xa8   :  { %v77_v9 = vsel %vm75_vm1, %v44_v5, 32 }
  0xa9   :  { %v79_v10 = vsel %vm53_vm0, %v77_v9, 2147483647 }
  0xaa   :  { %v59_v11 = vpop.xlane.xlu0 %58  ;;  %v81_v12 = vshra.s32 %v79_v10, 16  ;;  %v80_v21 = vand.u32 65535, %v79_v10 }
  0xab   :  { %v69_v14 = vrot.slane %v59_v11, %v328_v8  ;;  %vm76_vm3 = vcmp.eq.f32.partialorder %v52_v1, %v59_v11 }
  0xac   :  { %v78_v15 = vsel %vm76_vm3, %v44_v5, 32  ;;  %v83_v16 = vcvt.s32.f32 %v81_v12  ;;  %v82_v23 = vcvt.s32.f32 %v80_v21 }
  0xad   :  { %v94_v17 = vsel %vm53_vm0, %v78_v15, 2147483647  ;;  %v71_v18 = vsel %vm70_vm2, %v69_v14, %v65_v13 }
  0xae   :  { %84 = vmin.xlane.f32.xlu1 %v83_v16  ;;  %v96_v19 = vshra.s32 %v94_v17, 16  ;;  %74 = vst.msk [vmem:[#allocation8] sm:$0x3] %vm73_vm4, %v71_v18  ;;  %v95_v24 = vand.u32 65535, %v94_v17 }
  0xb0   :  { %v98_v20 = vcvt.s32.f32 %v96_v19  ;;  %v97_v27 = vcvt.s32.f32 %v95_v24 }
  0xb2   :  { %99 = vmin.xlane.f32.xlu1 %v98_v20 }
 0x137   :  { %v85_v22 = vpop.xlane.xlu1 %84 }
 0x138   :  { %vm86_vm5 = vcmp.eq.f32.partialorder %v83_v16, %v85_v22 }
 0x139   :  { %v87_v25 = vsel %vm86_vm5, %v82_v23, inf }
 0x13a   :  { %88 = vmin.xlane.f32.xlu0 %v87_v25 }
 0x13b   :  { %v100_v26 = vpop.xlane.xlu1 %99 }
 0x13c   :  { %vm101_vm6 = vcmp.eq.f32.partialorder %v98_v20, %v100_v26 }
 0x13d   :  { %v102_v28 = vsel %vm101_vm6, %v97_v27, inf }
 0x13e   :  { %103 = vmin.xlane.f32.xlu1 %v102_v28 }
 0x13f   :  { %230 = shalt.err (!%p227_p0)
}
 0x140   :  { %147 = dma.vmem_to_hbm [thread:$0]  %s145_s1, 32, %s353_s3, [#allocation9]   ;;  %50 = vst.msk [vmem:[#allocation7] sm:$0x3] %vm49_vm8, %v48_v33 }
 0x141   :  { %s239_s6 = scalar_lea.vmem %s135_s28, 32  ;;  %p244_p2 = scmp.lt.s32.totalorder %s135_s28, %s135_s28 }
 0x142   :  { %p240_p1 = scmp.ne.s32.totalorder %s135_s28, %s239_s6  ;;  %p245_p3 = scmp.lt.s32.totalorder %s239_s6, %s239_s6 }
 0x144   :  { %p246_p4 = por %p245_p3, %p244_p2 }
 0x146   :  { %p247_p5 = pnand %p246_p4, %p240_p1 }
 0x148   :  { %250 = shalt.err (!%p247_p5)
}
 0x149   :  { %137 = dma.vmem_to_hbm [thread:$0]  %s135_s28, 32, %s352_s2, [#allocation4]   ;;  %v91_v34 = vcvt.f32.s32 %v85_v22  ;;  %v106_v37 = vcvt.f32.s32 %v100_v26 }
 0x14a   :  { %s294_s3 = smov [#allocation10]  }
 0x14b   :  { %v92_v36 = vshll.u32 %v91_v34, 16  ;;  %v107_v41 = vshll.u32 %v106_v37, 16  ;;  %s154_s9 = sshll.u32 %s294_s3, 4  ;;  %s155_s9 = int_to_ptr.vmem [resolvable:$true] %s154_s9 }
 0x14c   :  { %s259_s2 = scalar_lea.vmem %s155_s9, 32  ;;  %p264_p7 = scmp.lt.s32.totalorder %s155_s9, %s155_s9 }
 0x14d   :  { %p260_p6 = scmp.ne.s32.totalorder %s155_s9, %s259_s2  ;;  %p265_p8 = scmp.lt.s32.totalorder %s259_s2, %s259_s2 }
 0x14f   :  { %p266_p9 = por %p265_p8, %p264_p7 }
 0x151   :  { %p267_p10 = pnand %p266_p9, %p260_p6 }
 0x1c3   :  { %v89_v35 = vpop.xlane.xlu0 %88 }
 0x1c4   :  { %v90_v38 = vcvt.f32.s32 %v89_v35 }
 0x1c6   :  { %v93_v39 = vadd.s32 %v92_v36, %v90_v38 }
 0x1c7   :  { %v104_v40 = vpop.xlane.xlu1 %103 }
 0x1c8   :  { %vm109_vm9 = vcmp.lt.s32.totalorder %v93_v39, 31  ;;  %v105_v42 = vcvt.f32.s32 %v104_v40 }
 0x1c9   :  { %v110_v43 = vsel %vm109_vm9, %v93_v39, 31 }
 0x1ca   :  { %v108_v44 = vadd.s32 %v107_v41, %v105_v42  ;;  %v113_v45 = vcvt.s32.f32 %v110_v43 }
 0x1cc   :  { %vm111_vm10 = vcmp.lt.s32.totalorder %v108_v44, 31  ;;  %v120_v48 = vrot.slane %v113_v45, %v328_v8 }
 0x1cd   :  { %v112_v46 = vsel %vm111_vm10, %v108_v44, 31 }
 0x1ce   :  { %v114_v47 = vcvt.s32.f32 %v112_v46 }
 0x1d0   :  { %v124_v49 = vrot.slane %v114_v47, %v328_v8 }
 0x1d2   :  { %v125_v50 = vsel %vm70_vm2, %v124_v49, %v120_v48 }
 0x1d3   :  { %127 = vst.msk [vmem:[#allocation10] sm:$0x3] %vm73_vm4, %v125_v50 }
 0x1d4   :  { %270 = shalt.err (!%p267_p10)
}
 0x1d5   :  { %157 = dma.vmem_to_hbm [thread:$0]  %s155_s9, 32, %s354_s4, [#allocation9]  }
 0x1d6   :  { %283 = dma.done.wait [#allocation4], 32  }
 0x1d7   :  { %284 = vsyncadd [#allocation4], 4294967264 }
 0x1d8   :  { %285 = dma.done.wait [#allocation9], 64  }
 0x1d9   :  { %286 = vsyncadd [#allocation9], 4294967232 }
 0x1da   :  { %167 = vsyncpa [#allocation3], 1 }
 0x1db   :  { %168 = vsyncpa [#allocation6], 1 }
 0x1dc   :  { %169 = vsyncpa [#allocation4], 1 }
 0x1dd   :  { %170 = vsyncpa [#allocation9], 1 }

</bundles_post_ra>
